<compile_context>
chip_gen: v7x
topology: tpu7x:2x2x1
jax: 0.10.0
libtpu: 0.0.40
codegen_flags: <defaults>
</compile_context>

<pallas_src>
import math

import jax
import jax.numpy as jnp
from jax.experimental import pallas as pl
from jax.experimental.pallas import tpu as pltpu


def _add_pe_kernel(x_ref, pe_ref, o_ref):
    """o = x + pe.

    Handles both layouts (block shapes are static, so the repeat factor is a Python int):
      * 3-D path (D % 128 == 0): x_ref (ts, D),  pe_ref (ts, D)  -> plain add
      * folded 2-D path        : x_ref (tr, tc), pe_ref (k, tc)  -> pe repeats every k rows
    """
    pe = pe_ref[...]
    reps = x_ref.shape[0] // pe.shape[0]
    if reps > 1:
        pe = jnp.tile(pe, (reps,) + (1,) * (pe.ndim - 1))
    o_ref[...] = x_ref[...] + pe


def make_pe_table(d_model: int, max_len: int = 15, dtype=jnp.float32) -> jnp.ndarray:
    """Deterministic sinusoidal positional-encoding table, shape (max_len, d_model)."""
    position = jnp.arange(0, max_len, dtype=jnp.float32)[:, None]
    div_term = jnp.exp(
        jnp.arange(0, d_model, 2, dtype=jnp.float32) * (-math.log(10000.0) / d_model)
    )
    angles = position * div_term
    pe = jnp.zeros((max_len, d_model), dtype=jnp.float32)
    pe = pe.at[:, 0::2].set(jnp.sin(angles))
    pe = pe.at[:, 1::2].set(jnp.cos(angles)[:, : d_model // 2])
    return pe.astype(dtype)


def _vmem_plan():
    """Return (vmem_limit_bytes, per-block byte budget), generation-aware.

    v5e/v6e: 128 MiB physical VMEM but only 16/32 MiB default scoped -> raise to 64 MiB.
    v7x    : 64 MiB physical per core -> 32 MiB scoped.
    Per-block budget ~ limit/10: x/out/pe are each double-buffered (6 live blocks) plus
    headroom for compiler-internal scratch.
    """
    try:
        phys = getattr(pltpu.get_tpu_info(), "vmem_capacity_bytes", None)
    except Exception:
        phys = None
    if not phys:
        phys = 64 * 1024 * 1024  # conservative fallback (v7x per-core size)
    limit = min(phys // 2, 64 * 1024 * 1024)
    return limit, max(limit // 10, 512 * 1024)


def _best_fold(B: int, S: int, D: int) -> int:
    """Fold factor k (divides S) for the lane-dense slab (B*k, (S//k)*D).

    Minimizes the (8,128)-padded footprint, preferring a 128-aligned last dim (unmasked
    stores), then the widest last dim, then the smallest k.
    """
    best_k, best_key = 1, None
    for k in range(1, min(S, 64) + 1):
        if S % k:
            continue
        r, c = B * k, (S // k) * D
        padded = pl.cdiv(r, 8) * 8 * pl.cdiv(c, 128) * 128
        key = (padded, 0 if c % 128 == 0 else 1, -c, k)
        if best_key is None or key < best_key:
            best_key, best_k = key, k
    return best_k


def positional_encoding(x: jnp.ndarray, pe: jnp.ndarray) -> jnp.ndarray:
    """x: (B, S, D); pe: (max_len, D). Returns x + pe[:S] broadcast over batch."""
    B, S, D = x.shape
    itemsize = jnp.dtype(x.dtype).itemsize
    sub = max(8, 32 // itemsize)  # native sublane tile: 8 f32, 16 bf16, 32 int8/fp8
    vmem_limit, block_budget = _vmem_plan()
    # Cast pe once up front (no in-kernel upcast, halves pe DMA for bf16).  This rounds pe
    # independently of the add: ~1 ulp different from computing x + pe in f32 then casting.
    pe_s = pe[:S, :].astype(x.dtype)

    if D % 128 == 0:
        # --- lane-aligned D: keep (B, S, D), squeeze batch, row-tile the sequence dim ---
        rows_budget = max(sub, block_budget // (D * itemsize))
        ts = min(S, max(sub, (rows_budget // sub) * sub))
        n_s = pl.cdiv(S, ts)
        # v7x has two TensorCores: make sure a non-trivial problem has >= 2 parallel steps.
        if n_s * B < 2 and S >= 2 * sub and S * D * itemsize > (1 << 20):
            ts = max(sub, ((S // 2) // sub) * sub)
            n_s = pl.cdiv(S, ts)

        return pl.pallas_call(
            _add_pe_kernel,
            out_shape=jax.ShapeDtypeStruct((B, S, D), x.dtype),
            grid_spec=pltpu.PrefetchScalarGridSpec(
                num_scalar_prefetch=0,
                # seq-tile outer, batch inner: pe's block index is constant across the inner
                # batch loop, so pe is fetched only n_s times total (do NOT flip this order).
                grid=(n_s, B),
                in_specs=[
                    pl.BlockSpec((pl.Squeezed(), ts, D), lambda s, b: (b, s, 0)),
                    # (pe is still double-buffered by default; its cost is included in the
                    # per-block budget above rather than relying on pipeline_mode tweaks.)
                    pl.BlockSpec((ts, D), lambda s, b: (s, 0)),
                ],
                out_specs=pl.BlockSpec((pl.Squeezed(), ts, D), lambda s, b: (b, s, 0)),
            ),
            compiler_params=pltpu.CompilerParams(
                dimension_semantics=("parallel", "parallel"),
                vmem_limit_bytes=vmem_limit,
            ),
            input_output_aliases={0: 0},  # donate x; in-place-style result
        )(x, pe_s)

    # --- D not lane-aligned (e.g. D=32): fold into a lane-dense 2-D slab ---------------
    # x (B, S, D) -> (B*k, (S//k)*D); pe repeats every k rows.  Fixes small-B sublane
    # occupancy while keeping the output last dim as lane-dense as possible.
    k = _best_fold(B, S, D)
    rows, cols = B * k, (S // k) * D
    # NOTE: row-major reshapes; if XLA ever materializes a relayout copy for them at large
    # scale, keep callers in the flattened layout end-to-end instead.
    x2 = x.reshape(rows, cols)
    pe2 = pe_s.reshape(k, cols)

    row_unit = sub * k // math.gcd(sub, k)  # block rows: multiple of sublane tile AND fold period
    if rows * cols * itemsize <= block_budget:
        tr, tc = rows, cols
    else:
        units = max(1, block_budget // (cols * itemsize * row_unit))
        tr = min(rows, units * row_unit)
        tc = cols
        if tr * tc * itemsize > block_budget and cols % 128 == 0:
            tc = max(128, (block_budget // (tr * itemsize) // 128) * 128)
    n_r, n_c = pl.cdiv(rows, tr), pl.cdiv(cols, tc)
    # v7x: give both TensorCores work on non-trivial single-step problems.
    if n_r * n_c < 2 and rows * cols * itemsize > (1 << 20):
        if rows >= 2 * row_unit:
            tr = row_unit * max(1, (rows // row_unit) // 2)
            n_r = pl.cdiv(rows, tr)
        elif cols % 256 == 0:
            tc = cols // 2
            n_c = pl.cdiv(cols, tc)

    out2 = pl.pallas_call(
        _add_pe_kernel,
        out_shape=jax.ShapeDtypeStruct((rows, cols), x.dtype),
        grid_spec=pltpu.PrefetchScalarGridSpec(
            num_scalar_prefetch=0,
            # column-tile outer, row-tile inner: pe's block index only depends on the column
            # tile, so it stays resident across the inner row loop.
            grid=(n_c, n_r),
            in_specs=[
                pl.BlockSpec((tr, tc), lambda c, r: (r, c)),
                pl.BlockSpec((k, tc), lambda c, r: (0, c)),
            ],
            out_specs=pl.BlockSpec((tr, tc), lambda c, r: (r, c)),
        ),
        compiler_params=pltpu.CompilerParams(
            dimension_semantics=("parallel", "parallel"),
            vmem_limit_bytes=vmem_limit,
        ),
        input_output_aliases={0: 0},
    )(x2, pe2)
    return out2.reshape(B, S, D)


if __name__ == "__main__":
    MAX_LEN = 15

    # Primary demo: shapes matching the PyTorch module usage (batch=2, seq=8, d_model=32).
    B, S, D = 2, 8, 32
    x = jax.random.normal(jax.random.PRNGKey(0), (B, S, D), dtype=jnp.float32)
    pe = make_pe_table(D, MAX_LEN)
    ref = x + pe[:S, :][None, :, :]  # compute reference BEFORE the (buffer-donating) kernel call
    out = jax.block_until_ready(positional_encoding(x, pe))
    assert out.shape == (B, S, D)
    assert jnp.allclose(out, ref, atol=1e-6), "mismatch vs reference (folded lane-dense path)"

    # Secondary check: lane-aligned d_model exercises the 3-D row-tiled (squeezed-batch) path.
    B2, S2, D2 = 2, 8, 128
    x_big = jax.random.normal(jax.random.PRNGKey(1), (B2, S2, D2), dtype=jnp.float32)
    pe_big = make_pe_table(D2, MAX_LEN)
    ref_big = x_big + pe_big[:S2, :][None, :, :]
    out_big = jax.block_until_ready(positional_encoding(x_big, pe_big))
    assert jnp.allclose(out_big, ref_big, atol=1e-6), "mismatch vs reference (row-tiled path)"

    print("KERNEL_OK")
</pallas_src>

<mosaic_0001>
module attributes {stable_mosaic.version = 11 : i64} {
  func.func @_add_pe_kernel(%arg0: i32, %arg1: i32, %arg2: memref<4x128xf32, #tpu.memory_space<vmem>>, %arg3: memref<2x128xf32, #tpu.memory_space<vmem>>, %arg4: memref<4x128xf32, #tpu.memory_space<vmem>>) attributes {dimension_semantics = [#tpu.dimension_semantics<parallel>, #tpu.dimension_semantics<parallel>], iteration_bounds = array<i64: 1, 1>, scalar_prefetch = 0 : i64, scratch_operands = 0 : i64, tpu.core_type = #tpu.core_type<tc>, window_params = [{transform_indices = @transform_0, window_bounds = array<i64: 4, 128>}, {transform_indices = @transform_1, window_bounds = array<i64: 2, 128>}, {transform_indices = @transform_2, window_bounds = array<i64: 4, 128>}]} {
    %c0 = arith.constant 0 : index
    %c0_0 = arith.constant 0 : index
    %0 = vector.load %arg3[%c0, %c0_0] : memref<2x128xf32, #tpu.memory_space<vmem>>, vector<2x128xf32>
    %1 = tpu.concatenate %0, %0 in 0 : vector<2x128xf32>, vector<2x128xf32> -> vector<4x128xf32>
    %c0_1 = arith.constant 0 : index
    %c0_2 = arith.constant 0 : index
    %2 = vector.load %arg2[%c0_1, %c0_2] : memref<4x128xf32, #tpu.memory_space<vmem>>, vector<4x128xf32>
    %3 = arith.addf %2, %1 : vector<4x128xf32>
    %c0_3 = arith.constant 0 : index
    %c0_4 = arith.constant 0 : index
    %4 = vector.load %arg4[%c0_3, %c0_4] : memref<4x128xf32, #tpu.memory_space<vmem>>, vector<4x128xf32>
    tpu.vector_store %arg4[%c0_3, %c0_4], %3 {strides = array<i32>} : memref<4x128xf32, #tpu.memory_space<vmem>>, vector<4x128xf32>,
    return
  }
  func.func @transform_0(%arg0: i32, %arg1: i32) -> (i32, i32) {
    %c0_i32 = arith.constant 0 : i32
    return %arg1, %arg0 : i32, i32
  }
  func.func @transform_1(%arg0: i32, %arg1: i32) -> (i32, i32) {
    %c0_i32 = arith.constant 0 : i32
    %c0_i32_0 = arith.constant 0 : i32
    return %c0_i32, %arg0 : i32, i32
  }
  func.func @transform_2(%arg0: i32, %arg1: i32) -> (i32, i32) {
    %c0_i32 = arith.constant 0 : i32
    return %arg1, %arg0 : i32, i32
  }
}

</mosaic_0001>

<bundles_post_ra>
// kernel: tpu_custom_call.1
= control target key start
LH: loop header
LB: loop body
LE: loop exit
PB: predicated region body
PF: predicated region fallthrough
CT: control target
= control target key end

     0   :  { %7 = vsyncpa [#allocation3], 0  ;;  %s142_s0 = inlined_call_operand.hbm [shape: f32[4,128], index: 0, kind: input, shape index: {}, may-alias: {0,2}]   ;;  %s143_s1 = inlined_call_operand.vmem [shape: f32[2,128], index: 1, kind: input, shape index: {}]   ;;  %s144_s2 = inlined_call_operand.hbm [shape: f32[4,128], index: 2, kind: output, shape index: {}, may-alias: {0,2}]  }
   0x1   :  { %8 = vsyncpa [#allocation4], 0  ;;  %s98_s9 = smov [#allocation2]   ;;  %s50_s13 = scalar_lea.hbm %s142_s0, 64 }
   0x2   :  { %s15_s10 = sshll.u32 %s98_s9, 4  ;;  %p51_p0 = scmp.ne.s32.totalorder %s142_s0, %s50_s13  ;;  %s16_s10 = int_to_ptr.vmem [resolvable:$true] %s15_s10 }
   0x3   :  { %p54_p1 = scmp.lt.u32.totalorder %s50_s13, %s142_s0 }
   0x5   :  { %p56_p2 = pnand %p54_p1, %p51_p0 }
   0x7   :  { %59 = shalt.err (!%p56_p2)
}
   0x8   :  { %s60_s18 = scalar_lea.vmem %s16_s10, 64  ;;  %p65_p4 = scmp.lt.s32.totalorder %s16_s10, %s16_s10 }
   0x9   :  { %p61_p3 = scmp.ne.s32.totalorder %s16_s10, %s60_s18  ;;  %p66_p5 = scmp.lt.s32.totalorder %s60_s18, %s60_s18 }
   0xb   :  { %p67_p6 = por %p66_p5, %p65_p4 }
   0xd   :  { %p68_p7 = pnand %p67_p6, %p61_p3 }
   0xf   :  { %71 = shalt.err (!%p68_p7)
}
  0x10   :  { %18 = dma.hbm_to_vmem [thread:$0]  %s142_s0, 64, %s16_s10, [#allocation3]  }
  0x11   :  { %94 = dma.done.wait [#allocation3], 64  }
  0x12   :  { %95 = vsyncadd [#allocation3], 4294967232  ;;  %v24_v0 = vld [vmem:[%s143_s1] sm:$0x3]  ;;  %vm28_vm0 = vcmask 1041408   ;;  %s99_s23 = smov [#allocation5]  }
  0x13   :  { %v26_v1 = vrot.slane %v24_v0, 6  ;;  %v30_v2 = vld [vmem:[#allocation2] sm:$0xf]  ;;  %s39_s24 = sshll.u32 %s99_s23, 4  ;;  %s40_s24 = int_to_ptr.vmem [resolvable:$true] %s39_s24 }
  0x14   :  { %s72_s25 = scalar_lea.vmem %s40_s24, 64  ;;  %p77_p9 = scmp.lt.s32.totalorder %s40_s24, %s40_s24 }
  0x15   :  { %v29_v3 = vsel %vm28_vm0, %v24_v0, %v26_v1  ;;  %p73_p8 = scmp.ne.s32.totalorder %s40_s24, %s72_s25  ;;  %p78_p10 = scmp.lt.s32.totalorder %s72_s25, %s72_s25 }
  0x16   :  { %v31_v4 = vadd.f32 %v30_v2, %v29_v3 }
  0x17   :  { %p79_p11 = por %p78_p10, %p77_p9 }
  0x18   :  { %32 = vst [vmem:[#allocation5] sm:$0xf] %v31_v4 }
  0x19   :  { %p80_p12 = pnand %p79_p11, %p73_p8 }
  0x1b   :  { %83 = shalt.err (!%p80_p12)
}
  0x1c   :  { %s84_s1 = scalar_lea.hbm %s144_s2, 64 }
  0x1d   :  { %p85_p13 = scmp.ne.s32.totalorder %s144_s2, %s84_s1  ;;  %p88_p0 = scmp.lt.u32.totalorder %s84_s1, %s144_s2 }
  0x1f   :  { %p90_p1 = pnand %p88_p0, %p85_p13 }
  0x21   :  { %93 = shalt.err (!%p90_p1)
}
  0x22   :  { %42 = dma.vmem_to_hbm [thread:$0]  %s40_s24, 64, %s144_s2, [#allocation4]  }
  0x23   :  { %96 = dma.done.wait [#allocation4], 64  }
  0x24   :  { %97 = vsyncadd [#allocation4], 4294967232 }
  0x25   :  { %46 = vsyncpa [#allocation3], 1 }
  0x26   :  { %47 = vsyncpa [#allocation4], 1 }

</bundles_post_ra>
